<compile_context>
chip_gen: v5e
topology: v5e:2x2
jax: 0.10.0
libtpu: 0.0.40
codegen_flags: <defaults>
</compile_context>

<pallas_src>
import functools

import jax
import jax.numpy as jnp
from jax import lax
from jax.experimental import pallas as pl
from jax.experimental.pallas import tpu as pltpu

EPS = 1e-6          # DINOv2 uses nn.LayerNorm(eps=1e-6)
NEG_INF = -1e30


def _round_up(x, m):
    return ((x + m - 1) // m) * m


def _row_tile(M, cap=512):
    """Largest multiple-of-16 divisor of M that is <= cap (M must be a multiple of 16)."""
    best = 16
    t = 16
    while t <= min(M, cap):
        if M % t == 0:
            best = t
        t += 16
    assert M % best == 0
    return best


def _layernorm(x, w, b):
    mu = jnp.mean(x, axis=-1, keepdims=True)
    var = jnp.mean((x - mu) ** 2, axis=-1, keepdims=True)
    return (x - mu) * lax.rsqrt(var + EPS) * w + b


# ----------------------------------------------------------------------------
# Compiler-params helpers: per-generation VMEM limit, single-buffered constants.
# ----------------------------------------------------------------------------
@functools.lru_cache(maxsize=1)
def _vmem_limit_bytes():
    try:
        cap = int(pltpu.get_tpu_info().vmem_capacity_bytes)
    except Exception:
        cap = 64 * 1024 * 1024
    # leave headroom under physical VMEM (v7x: 64 MiB, v5e/v6e: 128 MiB)
    return max(32 * 1024 * 1024, min(100 * 1024 * 1024, cap - 8 * 1024 * 1024))


def _cparams(sem):
    return pltpu.CompilerParams(dimension_semantics=sem,
                                vmem_limit_bytes=_vmem_limit_bytes())


_BUFFERED_OK = None


def _buffered_const_supported():
    """Probe once whether pipeline_mode=pl.Buffered(1) lowers cleanly."""
    global _BUFFERED_OK
    if _BUFFERED_OK is None:
        try:
            w = jnp.ones((8, 128), jnp.float32)
            spec = pl.BlockSpec((8, 128), lambda i: (0, 0),
                                pipeline_mode=pl.Buffered(1))

            def probe(w_ref, o_ref):
                o_ref[...] = w_ref[...] * 2.0

            out = pl.pallas_call(
                probe, grid=(2,), in_specs=[spec],
                out_specs=pl.BlockSpec((8, 128), lambda i: (0, 0)),
                out_shape=jax.ShapeDtypeStruct((8, 128), jnp.float32),
            )(w)
            jax.block_until_ready(out)
            _BUFFERED_OK = True
        except Exception:
            _BUFFERED_OK = False
    return _BUFFERED_OK


def _const_spec(a, grid_rank):
    """BlockSpec for a grid-invariant (resident) weight; single-buffered if possible."""
    zeros = (0,) * a.ndim
    if grid_rank == 1:
        idx = lambda i: zeros
    elif grid_rank == 2:
        idx = lambda i, j: zeros
    else:
        idx = lambda i, j, k: zeros
    if _buffered_const_supported():
        return pl.BlockSpec(a.shape, idx, pipeline_mode=pl.Buffered(1))
    return pl.BlockSpec(a.shape, idx)


# ----------------------------------------------------------------------------
# Kernel 1: patch embedding (Conv2d k=p, s=p == im2col + matmul), bf16 operands.
# ----------------------------------------------------------------------------
def patch_embed_kernel(x_ref, w_ref, b_ref, o_ref):
    o_ref[...] = (
        jnp.dot(x_ref[...], w_ref[...], preferred_element_type=jnp.float32)
        + b_ref[...]
    )


def run_patch_embed(patches_bf16, w_bf16, b_f32, *, row_tile):
    M, K = patches_bf16.shape
    D = w_bf16.shape[1]
    return pl.pallas_call(
        patch_embed_kernel,
        grid=(M // row_tile,),
        in_specs=[pl.BlockSpec((row_tile, K), lambda i: (i, 0)),
                  _const_spec(w_bf16, 1), _const_spec(b_f32, 1)],
        out_specs=pl.BlockSpec((row_tile, D), lambda i: (i, 0)),
        out_shape=jax.ShapeDtypeStruct((M, D), jnp.float32),
        compiler_params=_cparams(("parallel",)),
    )(patches_bf16, w_bf16, b_f32)


# ----------------------------------------------------------------------------
# Shared helper: project + split into (H, t, hd) head-major layout (done ONCE per
# token per block, upstream of attention, per the review).
# ----------------------------------------------------------------------------
def _qkv_heads(h_bf16, w, b, num_heads):
    t = h_bf16.shape[0]
    D = w.shape[1]
    hd = D // num_heads
    y = jnp.dot(h_bf16, w, preferred_element_type=jnp.float32) + b
    return y.reshape(t, num_heads, hd).transpose(1, 0, 2).astype(jnp.bfloat16)


# ----------------------------------------------------------------------------
# Kernel 2: LN1 + QKV for the FIRST block only (later blocks get QKV from the
# fused proj/MLP kernel epilogue). Outputs (B, H, SP, hd) bf16, q pre-scaled
# (scale folded into wq/bq).
# ----------------------------------------------------------------------------
def ln_qkv_kernel(x_ref, n1w, n1b, wq, wk, wv, bq, bk, bv,
                  q_ref, k_ref, v_ref, *, num_heads):
    h = _layernorm(x_ref[0], n1w[...], n1b[...]).astype(jnp.bfloat16)
    q_ref[0] = _qkv_heads(h, wq[...], bq[...], num_heads)
    k_ref[0] = _qkv_heads(h, wk[...], bk[...], num_heads)
    v_ref[0] = _qkv_heads(h, wv[...], bv[...], num_heads)


def run_ln_qkv(x3d, blk, *, t, num_heads):
    B, SP, D = x3d.shape
    hd = D // num_heads
    x_spec = pl.BlockSpec((1, t, D), lambda b, si: (b, si, 0))
    qkv_spec = pl.BlockSpec((1, num_heads, t, hd), lambda b, si: (b, 0, si, 0))
    weights = [blk["n1w"], blk["n1b"], blk["wq"], blk["wk"], blk["wv"],
               blk["bq"], blk["bk"], blk["bv"]]
    sds = jax.ShapeDtypeStruct((B, num_heads, SP, hd), jnp.bfloat16)
    return pl.pallas_call(
        functools.partial(ln_qkv_kernel, num_heads=num_heads),
        grid=(B, SP // t),
        in_specs=[x_spec] + [_const_spec(w, 2) for w in weights],
        out_specs=(qkv_spec, qkv_spec, qkv_spec),
        out_shape=(sds, sds, sds),
        compiler_params=_cparams(("parallel", "parallel")),
    )(x3d, *weights)


# ----------------------------------------------------------------------------
# Kernel 3: per-head attention core.  grid = (B, H, SP // q_tile), all parallel.
#   - scores are only (q_tile, SP) f32 per step (16x smaller than (H, tq, SP)),
#   - per-head K/V blocks stay resident across the innermost query-tile axis,
#   - padded keys masked via precomputed additive bias row,
#   - softmax denominator via EUP pl.reciprocal(approx=True).
# ----------------------------------------------------------------------------
def attention_kernel(q_ref, k_ref, v_ref, bias_ref, o_ref):
    q = q_ref[0, 0]                      # (t,  hd) bf16, pre-scaled by hd**-0.5
    k = k_ref[0, 0]                      # (SP, hd) bf16, resident across q tiles
    v = v_ref[0, 0]                      # (SP, hd) bf16
    s = jnp.einsum("qd,kd->qk", q, k,
                   preferred_element_type=jnp.float32) + bias_ref[...]
    m = jnp.max(s, axis=-1, keepdims=True)
    e = jnp.exp(s - m)
    p = e * pl.reciprocal(jnp.sum(e, axis=-1, keepdims=True), approx=True)
    ctx = jnp.dot(p.astype(jnp.bfloat16), v, preferred_element_type=jnp.float32)
    o_ref[0, 0] = ctx.astype(jnp.bfloat16)


def run_attention(q4, k4, v4, bias, *, t):
    B, H, SP, hd = q4.shape
    q_spec = pl.BlockSpec((1, 1, t, hd), lambda b, h, qi: (b, h, qi, 0))
    kv_spec = pl.BlockSpec((1, 1, SP, hd), lambda b, h, qi: (b, h, 0, 0))
    return pl.pallas_call(
        attention_kernel,
        grid=(B, H, SP // t),
        in_specs=[q_spec, kv_spec, kv_spec, _const_spec(bias, 3)],
        out_specs=q_spec,
        out_shape=jax.ShapeDtypeStruct((B, H, SP, hd), jnp.bfloat16),
        compiler_params=_cparams(("parallel", "parallel", "parallel")),
    )(q4, k4, v4, bias)


# ----------------------------------------------------------------------------
# Kernel 4: fused  attn-proj + LayerScale + residual + LN2 + MLP + LayerScale +
# residual, plus EITHER the next block's LN1+QKV (emit_qkv) OR the final
# LayerNorm (apply_final_norm).  Row-tiled: grid = (B, SP // t).
# ----------------------------------------------------------------------------
def proj_mlp_kernel(*refs, num_heads, emit_qkv, apply_final_norm):
    n_in = 12 + (8 if emit_qkv else 0) + (2 if apply_final_norm else 0)
    ins, outs = refs[:n_in], refs[n_in:]
    (x_ref, ctx_ref, projw, projb, g1,
     n2w, n2b, fc1w, fc1b, fc2w, fc2b, g2) = ins[:12]
    pos = 12
    if emit_qkv:
        n1w, n1b, wq, wk, wv, bq, bk, bv = ins[pos:pos + 8]
        pos += 8
    if apply_final_norm:
        fnw, fnb = ins[pos:pos + 2]

    x = x_ref[0]                               # (t, D) f32 residual stream
    ctx = ctx_ref[0]                           # (H, t, hd) bf16 per-head attention out
    _, t, hd = ctx.shape
    D = x.shape[1]

    # heads -> features (once per token per block), then output projection
    attn = ctx.transpose(1, 0, 2).reshape(t, D)
    y = jnp.dot(attn, projw[...], preferred_element_type=jnp.float32) + projb[...]
    x = x + g1[...] * y                        # LayerScale + residual

    # LN2 + MLP + LayerScale + residual
    # TODO(synk): for ViT-g on v7x (fc1w+fc2w ~36 MiB bf16) tile the 4D hidden dim
    # with an fc2 accumulator instead of keeping both weights fully resident.
    h = _layernorm(x, n2w[...], n2b[...]).astype(jnp.bfloat16)
    mlp = jnp.dot(h, fc1w[...], preferred_element_type=jnp.float32) + fc1b[...]
    mlp = jax.nn.gelu(mlp, approximate=False)  # PyTorch nn.GELU() default = exact erf
    y2 = jnp.dot(mlp.astype(jnp.bfloat16), fc2w[...],
                 preferred_element_type=jnp.float32) + fc2b[...]
    x = x + g2[...] * y2

    if apply_final_norm:
        x = _layernorm(x, fnw[...], fnb[...])

    outs[0][0] = x                             # updated f32 residual stream

    if emit_qkv:                               # next block's LN1 + QKV, fused here
        hn = _layernorm(x, n1w[...], n1b[...]).astype(jnp.bfloat16)
        outs[1][0] = _qkv_heads(hn, wq[...], bq[...], num_heads)
        outs[2][0] = _qkv_heads(hn, wk[...], bk[...], num_heads)
        outs[3][0] = _qkv_heads(hn, wv[...], bv[...], num_heads)


def run_proj_mlp(x3d, ctx4, blk, *, next_blk, final_norm, t, num_heads):
    B, SP, D = x3d.shape
    hd = D // num_heads
    x_spec = pl.BlockSpec((1, t, D), lambda b, si: (b, si, 0))
    ctx_spec = pl.BlockSpec((1, num_heads, t, hd), lambda b, si: (b, 0, si, 0))

    emit_qkv = next_blk is not None
    apply_final = final_norm is not None

    weights = [blk["projw"], blk["projb"], blk["g1"], blk["n2w"], blk["n2b"],
               blk["fc1w"], blk["fc1b"], blk["fc2w"], blk["fc2b"], blk["g2"]]
    if emit_qkv:
        nb = next_blk
        weights += [nb["n1w"], nb["n1b"], nb["wq"], nb["wk"], nb["wv"],
                    nb["bq"], nb["bk"], nb["bv"]]
    if apply_final:
        weights += list(final_norm)

    out_shapes = [jax.ShapeDtypeStruct((B, SP, D), jnp.float32)]
    out_specs = [x_spec]
    if emit_qkv:
        qkv_sds = jax.ShapeDtypeStruct((B, num_heads, SP, hd), jnp.bfloat16)
        out_shapes += [qkv_sds] * 3
        out_specs += [ctx_spec] * 3

    res = pl.pallas_call(
        functools.partial(proj_mlp_kernel, num_heads=num_heads,
                          emit_qkv=emit_qkv, apply_final_norm=apply_final),
        grid=(B, SP // t),
        in_specs=[x_spec, ctx_spec] + [_const_spec(w, 2) for w in weights],
        out_specs=tuple(out_specs),
        out_shape=tuple(out_shapes),
        compiler_params=_cparams(("parallel", "parallel")),
    )(x3d, ctx4, *weights)
    if emit_qkv:
        return res[0], res[1], res[2], res[3]
    return res[0]


# ----------------------------------------------------------------------------
# Forward pass (mirrors DinoV2Backbone.forward: eval mode, masks=None,
# no register tokens).
# ----------------------------------------------------------------------------
def dinov2_forward(x_nchw, params, *, q_tile=128):
    # q_tile: 128 on v5e/v7x, 256 on v6e at real DINOv2 sizes; small at toy sizes.
    assert q_tile % 8 == 0
    B, C, H, W = x_nchw.shape
    p = params["patch_size"]
    D = params["embed_dim"]
    nh = params["num_heads"]
    hp, wp = H // p, W // p
    Np = hp * wp
    S = 1 + Np

    # ---- patch embed: im2col + Pallas matmul (Conv2d kernel=stride=p) ----
    patches = (
        x_nchw.reshape(B, C, hp, p, wp, p)
        .transpose(0, 2, 4, 1, 3, 5)
        .reshape(B * Np, C * p * p)
    ).astype(jnp.bfloat16)
    K = patches.shape[1]
    Kpad = params["patch_w"].shape[0]            # padded to multiple of 128
    if Kpad > K:
        patches = jnp.pad(patches, ((0, 0), (0, Kpad - K)))
    Mpe = B * Np
    Mpe_pad = _round_up(Mpe, 16)
    if Mpe_pad > Mpe:
        patches = jnp.pad(patches, ((0, Mpe_pad - Mpe), (0, 0)))
    tok = run_patch_embed(patches, params["patch_w"], params["patch_b"],
                          row_tile=_row_tile(Mpe_pad))
    tok = tok[:Mpe].reshape(B, Np, D)

    # prepend cls token, add positional embedding
    cls = jnp.broadcast_to(params["cls_token"], (B, 1, D))
    x = jnp.concatenate([cls, tok], axis=1) + params["pos_embed"]   # (B, S, D) f32
    # TODO(synk): interpolate_pos_encoding (bicubic) skipped — input grid == pos_embed grid here.

    # pad sequence to a multiple of the query tile
    SP = _round_up(S, q_tile)
    if SP > S:
        x = jnp.pad(x, ((0, 0), (0, SP - S), (0, 0)))

    # additive key-padding bias row: 0 for valid keys, -inf for padded keys
    bias = jnp.where(jnp.arange(SP) < S, 0.0, NEG_INF)[None, :].astype(jnp.float32)

    blocks = params["blocks"]
    nblk = len(blocks)
    # first block's LN1 + QKV (subsequent ones come fused out of the MLP kernel)
    q4, k4, v4 = run_ln_qkv(x, blocks[0], t=q_tile, num_heads=nh)
    for i, blk in enumerate(blocks):
        ctx = run_attention(q4, k4, v4, bias, t=q_tile)
        if i + 1 < nblk:
            x, q4, k4, v4 = run_proj_mlp(x, ctx, blk, next_blk=blocks[i + 1],
                                         final_norm=None, t=q_tile, num_heads=nh)
        else:
            x = run_proj_mlp(x, ctx, blk, next_blk=None,
                             final_norm=(params["norm_w"], params["norm_b"]),
                             t=q_tile, num_heads=nh)

    # patch tokens -> (N, C, H, W)
    patch_tokens = x[:, 1:S, :]
    Hp = Wp = int(Np ** 0.5)
    return patch_tokens.transpose(0, 2, 1).reshape(B, D, Hp, Wp)


# ----------------------------------------------------------------------------
# Deterministic synthetic parameters (PyTorch DINOv2 layout, scaled down),
# then converted to kernel layout (bf16 weights, split qkv with the head scale
# folded into wq/bq, patch-embed K padded to a multiple of 128).
# ----------------------------------------------------------------------------
def init_params(key, *, embed_dim=64, depth=2, num_heads=4, patch_size=4,
                in_chans=3, num_patches=16):
    D = embed_dim
    keys = jax.random.split(key, 4 + depth)

    def rnd(k, shape):
        return jax.random.normal(k, shape, jnp.float32) * 0.02

    params = dict(embed_dim=D, num_heads=num_heads, patch_size=patch_size)
    params["patch_w"] = rnd(keys[0], (in_chans * patch_size * patch_size, D))
    params["patch_b"] = jnp.zeros((1, D), jnp.float32)
    params["cls_token"] = rnd(keys[1], (1, 1, D))
    params["pos_embed"] = rnd(keys[2], (1, 1 + num_patches, D))
    params["norm_w"] = jnp.ones((1, D), jnp.float32)
    params["norm_b"] = jnp.zeros((1, D), jnp.float32)

    blocks = []
    for i in range(depth):
        bk = jax.random.split(keys[4 + i], 4)
        blocks.append(dict(
            n1w=jnp.ones((1, D), jnp.float32), n1b=jnp.zeros((1, D), jnp.float32),
            qkvw=rnd(bk[0], (D, 3 * D)), qkvb=jnp.zeros((1, 3 * D), jnp.float32),
            projw=rnd(bk[1], (D, D)), projb=jnp.zeros((1, D), jnp.float32),
            g1=jnp.full((1, D), 1e-5, jnp.float32),    # LayerScale init (DINOv2)
            n2w=jnp.ones((1, D), jnp.float32), n2b=jnp.zeros((1, D), jnp.float32),
            fc1w=rnd(bk[2], (D, 4 * D)), fc1b=jnp.zeros((1, 4 * D), jnp.float32),
            fc2w=rnd(bk[3], (4 * D, D)), fc2b=jnp.zeros((1, D), jnp.float32),
            g2=jnp.full((1, D), 1e-5, jnp.float32),
        ))
    params["blocks"] = blocks
    return params


def prepare_params(raw):
    """PyTorch-layout f32 params -> kernel layout."""
    D = raw["embed_dim"]
    nh = raw["num_heads"]
    scale = (D // nh) ** -0.5
    out = dict(embed_dim=D, num_heads=nh, patch_size=raw["patch_size"])

    pw = raw["patch_w"]
    K = pw.shape[0]
    Kpad = _round_up(K, 128)               # lane-aligned patch-embed K
    if Kpad > K:
        pw = jnp.pad(pw, ((0, Kpad - K), (0, 0)))
    out["patch_w"] = pw.astype(jnp.bfloat16)
    out["patch_b"] = raw["patch_b"]
    out["cls_token"] = raw["cls_token"]
    out["pos_embed"] = raw["pos_embed"]
    out["norm_w"] = raw["norm_w"]
    out["norm_b"] = raw["norm_b"]

    blocks = []
    for b in raw["blocks"]:
        qkvw, qkvb = b["qkvw"], b["qkvb"]
        blocks.append(dict(
            n1w=b["n1w"], n1b=b["n1b"],
            # head_dim**-0.5 folded into the q projection (static fold, review item)
            wq=(qkvw[:, 0:D] * scale).astype(jnp.bfloat16),
            wk=qkvw[:, D:2 * D].astype(jnp.bfloat16),
            wv=qkvw[:, 2 * D:3 * D].astype(jnp.bfloat16),
            bq=qkvb[:, 0:D] * scale, bk=qkvb[:, D:2 * D], bv=qkvb[:, 2 * D:3 * D],
            projw=b["projw"].astype(jnp.bfloat16), projb=b["projb"], g1=b["g1"],
            n2w=b["n2w"], n2b=b["n2b"],
            fc1w=b["fc1w"].astype(jnp.bfloat16), fc1b=b["fc1b"],
            fc2w=b["fc2w"].astype(jnp.bfloat16), fc2b=b["fc2b"], g2=b["g2"],
        ))
    out["blocks"] = blocks
    return out


if __name__ == "__main__":
    key = jax.random.PRNGKey(0)
    kx, kp = jax.random.split(key)

    B, C, H, W = 2, 3, 16, 16               # small synthetic input (NCHW, like PyTorch)
    patch_size, embed_dim, num_heads, depth = 4, 64, 4, 2
    num_patches = (H // patch_size) * (W // patch_size)   # 16 -> 4x4 patch grid

    x = jax.random.normal(kx, (B, C, H, W), jnp.float32)
    raw_params = init_params(
        kp, embed_dim=embed_dim, depth=depth, num_heads=num_heads,
        patch_size=patch_size, in_chans=C, num_patches=num_patches,
    )
    params = prepare_params(raw_params)

    # q_tile=16 at toy sizes (use 128 on v5e/v7x, 256 on v6e at real DINOv2 sizes)
    out = dinov2_forward(x, params, q_tile=16)
    out = jax.block_until_ready(out)
    assert out.shape == (B, embed_dim, 4, 4), out.shape
    assert out.dtype == jnp.float32
    print("KERNEL_OK")
</pallas_src>

<mosaic_0001>
module attributes {stable_mosaic.version = 11 : i64} {
  func.func @probe(%arg0: i32, %arg1: memref<8x128xf32, #tpu.memory_space<vmem>>, %arg2: memref<8x128xf32, #tpu.memory_space<vmem>>) attributes {dimension_semantics = [#tpu.dimension_semantics<arbitrary>], iteration_bounds = array<i64: 2>, scalar_prefetch = 0 : i64, scratch_operands = 0 : i64, tpu.core_type = #tpu.core_type<tc>, window_params = [{pipeline_mode = #tpu.pipeline_mode<synchronous>, transform_indices = @transform_0, window_bounds = array<i64: 8, 128>}, {pipeline_mode = #tpu.pipeline_mode<synchronous>, transform_indices = @transform_1, window_bounds = array<i64: 8, 128>}]} {
    %c0 = arith.constant 0 : index
    %c0_0 = arith.constant 0 : index
    %0 = vector.load %arg1[%c0, %c0_0] : memref<8x128xf32, #tpu.memory_space<vmem>>, vector<8x128xf32>
    %cst = arith.constant 2.000000e+00 : f32
    %1 = vector.broadcast %cst : f32 to vector<8x128xf32>
    %2 = arith.mulf %0, %1 : vector<8x128xf32>
    %c0_1 = arith.constant 0 : index
    %c0_2 = arith.constant 0 : index
    %3 = vector.load %arg2[%c0_1, %c0_2] : memref<8x128xf32, #tpu.memory_space<vmem>>, vector<8x128xf32>
    tpu.vector_store %arg2[%c0_1, %c0_2], %2 {strides = array<i32>} : memref<8x128xf32, #tpu.memory_space<vmem>>, vector<8x128xf32>,
    return
  }
  func.func @transform_0(%arg0: i32) -> (i32, i32) {
    %c0_i32 = arith.constant 0 : i32
    %c0_i32_0 = arith.constant 0 : i32
    %c0_i32_1 = arith.constant 0 : i32
    return %c0_i32, %c0_i32_0 : i32, i32
  }
  func.func @transform_1(%arg0: i32) -> (i32, i32) {
    %c0_i32 = arith.constant 0 : i32
    %c0_i32_0 = arith.constant 0 : i32
    %c0_i32_1 = arith.constant 0 : i32
    return %c0_i32, %c0_i32_0 : i32, i32
  }
}

module attributes {stable_mosaic.version = 11 : i64} {
  func.func @patch_embed_kernel(%arg0: i32, %arg1: memref<32x128xbf16, #tpu.memory_space<vmem>>, %arg2: memref<128x64xbf16, #tpu.memory_space<vmem>>, %arg3: memref<1x64xf32, #tpu.memory_space<vmem>>, %arg4: memref<32x64xf32, #tpu.memory_space<vmem>>) attributes {dimension_semantics = [#tpu.dimension_semantics<parallel>], iteration_bounds = array<i64: 1>, scalar_prefetch = 0 : i64, scratch_operands = 0 : i64, tpu.core_type = #tpu.core_type<tc>, window_params = [{transform_indices = @transform_0, window_bounds = array<i64: 32, 128>}, {pipeline_mode = #tpu.pipeline_mode<synchronous>, transform_indices = @transform_1, window_bounds = array<i64: 128, 64>}, {pipeline_mode = #tpu.pipeline_mode<synchronous>, transform_indices = @transform_2, window_bounds = array<i64: 1, 64>}, {transform_indices = @transform_3, window_bounds = array<i64: 32, 64>}]} {
    %c0 = arith.constant 0 : index
    %c0_0 = arith.constant 0 : index
    %0 = vector.load %arg1[%c0, %c0_0] : memref<32x128xbf16, #tpu.memory_space<vmem>>, vector<32x128xbf16>
    %c0_1 = arith.constant 0 : index
    %c0_2 = arith.constant 0 : index
    %1 = vector.load %arg2[%c0_1, %c0_2] : memref<128x64xbf16, #tpu.memory_space<vmem>>, vector<128x64xbf16>
    %cst = arith.constant dense<0.000000e+00> : vector<32x64xf32>
    %2 = tpu.matmul %0, %1, %cst {dimension_numbers = #tpu.dot_dimension_numbers<[1], [0], [0], [1], [0, 0, 1, 1], [], []>} : vector<32x128xbf16>, vector<128x64xbf16>, vector<32x64xf32> -> vector<32x64xf32>
    %c0_3 = arith.constant 0 : index
    %c0_4 = arith.constant 0 : index
    %3 = vector.load %arg3[%c0_3, %c0_4] : memref<1x64xf32, #tpu.memory_space<vmem>>, vector<1x64xf32>
    %4 = vector.broadcast %3 : vector<1x64xf32> to vector<32x64xf32>
    %5 = arith.addf %2, %4 : vector<32x64xf32>
    %c0_5 = arith.constant 0 : index
    %c0_6 = arith.constant 0 : index
    %6 = vector.load %arg4[%c0_5, %c0_6] : memref<32x64xf32, #tpu.memory_space<vmem>>, vector<32x64xf32>
    tpu.vector_store %arg4[%c0_5, %c0_6], %5 {strides = array<i32>} : memref<32x64xf32, #tpu.memory_space<vmem>>, vector<32x64xf32>,
    return
  }
  func.func @transform_0(%arg0: i32) -> (i32, i32) {
    %c0_i32 = arith.constant 0 : i32
    %c0_i32_0 = arith.constant 0 : i32
    return %arg0, %c0_i32 : i32, i32
  }
  func.func @transform_1(%arg0: i32) -> (i32, i32) {
    %c0_i32 = arith.constant 0 : i32
    %c0_i32_0 = arith.constant 0 : i32
    %c0_i32_1 = arith.constant 0 : i32
    return %c0_i32, %c0_i32_0 : i32, i32
  }
  func.func @transform_2(%arg0: i32) -> (i32, i32) {
    %c0_i32 = arith.constant 0 : i32
    %c0_i32_0 = arith.constant 0 : i32
    %c0_i32_1 = arith.constant 0 : i32
    return %c0_i32, %c0_i32_0 : i32, i32
  }
  func.func @transform_3(%arg0: i32) -> (i32, i32) {
    %c0_i32 = arith.constant 0 : i32
    %c0_i32_0 = arith.constant 0 : i32
    return %arg0, %c0_i32 : i32, i32
  }
}

</mosaic_0001>

<bundles_post_ra>
// kernel: tpu_custom_call.1
= control target key start
LH: loop header
LB: loop body
LE: loop exit
PB: predicated region body
PF: predicated region fallthrough
CT: control target
= control target key end

     0   :  { %6 = vsyncpa [#allocation3], 0  ;;  %s287_s0 = inlined_call_operand.hbm [shape: f32[8,128], index: 0, kind: input, shape index: {}]   ;;  %s288_s1 = inlined_call_operand.hbm [shape: f32[8,128], index: 1, kind: output, shape index: {}]  }
   0x1   :  { %7 = vsyncpa [#allocation4], 0  ;;  %s270_s6 = smov 0  }
   0x2 LB: > { %s149_s7 = sadd.s32 4294967295, %s256_s6   ;;  %p150_p0 = scmp.ge.s32.totalorder %s256_s6, 1  ;;  %s256_s6 = sphi %s270_s6, %s13_s6  }
   0x3   : > { %p60_p1 = scmp.lt.s32.totalorder %s256_s6, 3  ;;  %s72_s10 = sshll.u32 %s287_s0, 4  ;;  %s73_s10 = int_to_ptr.hbm [resolvable:$true] %s72_s10 }
   0x4   : > { %p170_p3 = scmp.eq.s32.totalorder %s149_s7, 0  ;;  %s258_s11 = smov [#allocation2]  }
   0x5   : > { %p61_p2 = pnand %p150_p0, %p60_p1  ;;  %s74_s12 = sshll.u32 %s258_s11, 4  ;;  %s75_s12 = int_to_ptr.vmem [resolvable:$true] %s74_s12 }
   0x7   : > { %p166_p4 = pneg %p61_p2  ;;  %87 = sbr.rel (%p61_p2) target bundleno = 20 (0x14), region = 24 }
   0x9   : > { %p167_p5 = pnand %p170_p3, %p166_p4 }
   0xb   : > { %169 = dma.hbm_to_vmem [thread:$0]  (!%p167_p5), %s73_s10, 128, %s75_s12, [#allocation3]  }
   0xc   : > { %247 = dma.done.wait (%p170_p3), [#allocation3], 128  }
   0xd   : > { %249 = vsyncadd (%p170_p3), [#allocation3], 4294967168  ;;  %s259_s13 = smov [#allocation5]   ;;  %s109_s17 = sshll.u32 %s288_s1, 4  ;;  %v98_v0 = vld [vmem:[#allocation2] sm:$0xff]  ;;  %s110_s17 = int_to_ptr.hbm [resolvable:$true] %s109_s17 }
   0xe   : > { %s107_s14 = sshll.u32 %s259_s13, 4  ;;  %p172_p6 = scmp.eq.s32.totalorder %s149_s7, 1  ;;  %v99_v1 = vmul.f32 2.0, %v98_v0  ;;  %s108_s14 = int_to_ptr.vmem [resolvable:$true] %s107_s14 }
  0x10   : > { %100 = vst [vmem:[#allocation5] sm:$0xff] %v99_v1 }
  0x11   : > { %163 = dma.vmem_to_hbm [thread:$0]  (%p172_p6), %s108_s14, 128, %s110_s17, [#allocation4]  }
  0x12   : > { %251 = dma.done.wait (%p172_p6), [#allocation4], 128  }
  0x13   : > { %253 = vsyncadd (%p172_p6), [#allocation4], 4294967168 }
  0x14 PF: > { %s13_s6 = sadd.s32 1, %s256_s6  }
  0x15   : > { %p10_p7 = scmp.ge.s32.totalorder %s13_s6, 4  }
  0x17   :  { %12 = sbr.rel (!%p10_p7) target bundleno = 2 (0x2), region = 53 }
  0x1c   :  { %123 = vsyncpa [#allocation3], 1 }
  0x1d   :  { %125 = vsyncpa [#allocation3 + $0x1], 1 }
  0x1e   :  { %126 = vsyncpa [#allocation4], 1 }
  0x1f   :  { %128 = vsyncpa [#allocation4 + $0x1], 1 }

// kernel: tpu_custom_call.1
= control target key start
LH: loop header
LB: loop body
LE: loop exit
PB: predicated region body
PF: predicated region fallthrough
CT: control target
= control target key end

     0   :  { %s292_s0 = inlined_call_operand.vmem [shape: bf16[32,128], index: 0, kind: input, shape index: {}]   ;;  %s293_s1 = inlined_call_operand.vmem [shape: bf16[128,64], index: 1, kind: input, shape index: {}]   ;;  %s294_s2 = inlined_call_operand.vmem [shape: f32[1,64], index: 2, kind: input, shape index: {}]   ;;  %s295_s3 = inlined_call_operand.hbm [shape: f32[32,64], index: 3, kind: output, shape index: {}]  }
   0x1   :  { %v190_v0 = vld [vmem:[%s293_s1 + $0x38] sm:$0xff]  ;;  %v189_v1 = vld [vmem:[%s293_s1 + $0x30] sm:$0xff] }
   0x2   :  { %99 = vmatpush.bf16.msra.mxu0 %v190_v0  ;;  %191 = vmatpush.bf16.msra.mxu1 %v190_v0 }
   0x3   :  { %8 = vsyncpa [#allocation3], 0  ;;  %v188_v2 = vld [vmem:[%s293_s1 + $0x28] sm:$0xff]  ;;  %v187_v3 = vld [vmem:[%s293_s1 + $0x20] sm:$0xff]  ;;  %vm118_vm0 = vcmask 523264   ;;  %s129_s9 = sshll.u32 %s295_s3, 4  ;;  %s130_s9 = int_to_ptr.hbm [resolvable:$true] %s129_s9 }
   0x4   :  { %v186_v4 = vld [vmem:[%s293_s1 + $0x18] sm:$0xff]  ;;  %v185_v5 = vld [vmem:[%s293_s1 + $0x10] sm:$0xff]  ;;  %v184_v6 = vld [vmem:[%s293_s1 + $0x8] sm:$0xff]  ;;  %s231_s10 = smov 8  }
   0x5   :  { %v183_v7 = vld [vmem:[%s293_s1] sm:$0xff]  ;;  %v182_v9 = vld [vmem:[%s292_s0 + $0x8] sm:$0xff]  ;;  %s229_s1 = smov [#allocation2]  }
   0x6   :  { %100 = vmatpush.bf16.msra.mxu0 %v189_v1  ;;  %192 = vmatpush.bf16.msra.mxu1 %v189_v1  ;;  %v181_v8 = vld [vmem:[%s292_s0] sm:$0xff]  ;;  %s127_s7 = sshll.u32 %s229_s1, 4  ;;  %s128_s7 = int_to_ptr.vmem [resolvable:$true] %s127_s7 }
   0x7   :  { %v202_v10 = vld [vmem:[%s294_s2] ss:$0 sm:$0xff]  ;;  %s230_s2 = smov 128  }
   0xa   :  { %101 = vmatpush.bf16.msra.mxu0 %v188_v2  ;;  %193 = vmatpush.bf16.msra.mxu1 %v188_v2 }
   0xe   :  { %102 = vmatpush.bf16.msra.mxu0 %v187_v3  ;;  %194 = vmatpush.bf16.msra.mxu1 %v187_v3 }
  0x12   :  { %103 = vmatpush.bf16.msra.mxu0 %v186_v4  ;;  %195 = vmatpush.bf16.msra.mxu1 %v186_v4 }
  0x16   :  { %104 = vmatpush.bf16.msra.mxu0 %v185_v5  ;;  %196 = vmatpush.bf16.msra.mxu1 %v185_v5 }
  0x1a   :  { %105 = vmatpush.bf16.msra.mxu0 %v184_v6  ;;  %197 = vmatpush.bf16.msra.mxu1 %v184_v6 }
  0x1e   :  { %106 = vmatpush.bf16.msra.mxu0 %v183_v7  ;;  %198 = vmatpush.bf16.msra.mxu1 %v183_v7 }
  0x21   :  { %107 = vmatmul.bf16.vlgmr.msra.gmra.mxu0 %v181_v8  ;;  %112 = vmatmul.bf16.vlgmr.msra.gmra.mxu1 %v182_v9 }
  0x9e   :  { %v108_v11 = vpop.f32.mrf.mxu0  ;;  %v113_v12 = vpop.f32.mrf.mxu1 }
  0x9f   :  { %v109_v13 = vadd.f32 %v202_v10, %v108_v11  ;;  %v114_v14 = vadd.f32 %v202_v10, %v113_v12 }
  0xa1   :  { %119 = vst.msk [vmem:[#allocation2] sm:$0xff] %vm118_vm0, %v109_v13 }
  0xa2   :  { %121 = vst.msk [vmem:[#allocation2 + $0x10] sm:$0xff] %vm118_vm0, %v114_v14 }
  0xa6   :  { %v110_v15 = vpop.f32.mrf.mxu0  ;;  %v115_v16 = vpop.f32.mrf.mxu1 }
  0xa7   :  { %v111_v17 = vadd.f32 %v202_v10, %v110_v15  ;;  %v116_v18 = vadd.f32 %v202_v10, %v115_v16 }
  0xa9   :  { %120 = vst.msk [vmem:[#allocation2 + $0x8] sm:$0xff] %vm118_vm0, %v111_v17 }
  0xaa   :  { %122 = vst.msk [vmem:[#allocation2 + $0x18] sm:$0xff] %vm118_vm0, %v116_v18 }
  0xab   :  { %135 = dma.vmem_to_hbm [thread:$0]  %s128_s7, 512, %s130_s9, [#allocation3], %s230_s2, %s230_s2, %s231_s10  }
  0xac   :  { %227 = dma.done.wait [#allocation3], 512  }
  0xad   :  { %228 = vsyncadd [#allocation3], 4294966784 }
  0xae   :  { %140 = vsyncpa [#allocation3], 1 }

</bundles_post_ra>
